<compile_context>
chip_gen: v5e
topology: v5e:2x2
jax: 0.10.0
libtpu: 0.0.40
codegen_flags: <defaults>
</compile_context>

<pallas_src>
import jax
import jax.numpy as jnp
from jax.experimental import pallas as pl
from jax.experimental.pallas import tpu as pltpu

L = 256          # input feature dim (PyTorch default)
D = 512          # hidden dim (PyTorch default)
N_CLASSES = 21   # output dim (PyTorch default)
NC_PAD = 128     # lane-dense padded output width


def _round_up(x, m):
    return ((x + m - 1) // m) * m


def gated_attn_kernel(x_ref, wab_ref, bab_ref, wc_ref, bc_ref, out_ref):
    x = x_ref[...]                                              # (tm, L)
    # Fused attention_a / attention_b projections: one MXU pass over x.
    y = jnp.dot(x, wab_ref[...], preferred_element_type=jnp.float32) + bab_ref[...]
    a = jnp.tanh(y[:, :D])                                      # Tanh branch   (EUP)
    b = jax.nn.sigmoid(y[:, D:])                                # Sigmoid branch (EUP)
    ab = (a * b).astype(wc_ref.dtype)                           # gating: a.mul(b)
    # attention_c: Linear(D, n_classes) -> padded to 128 lanes (bc pad is zero).
    out = jnp.dot(ab, wc_ref[...], preferred_element_type=jnp.float32) + bc_ref[...]
    out_ref[...] = out.astype(out_ref.dtype)


def attn_net_gated_forward(x, params, *, tm=512, use_bf16=True):
    """x: (B, N, L) float32. Returns (A, x) with A: (B, N, n_classes) float32."""
    wa, ba, wb, bb, wc, bc = params
    B, N, Lf = x.shape
    assert Lf == L
    M = B * N
    x2 = x.reshape(M, L)

    # Fuse the two L->D projections into one (L, 2D) weight / (1, 2D) bias.
    wab = jnp.concatenate([wa, wb], axis=1)                     # (L, 2D)
    bab = jnp.concatenate([ba, bb], axis=1)                     # (1, 2D), kept f32
    # Lane-dense classifier: zero-pad to 128 output lanes.
    wc_p = jnp.pad(wc, ((0, 0), (0, NC_PAD - N_CLASSES)))       # (D, 128)
    bc_p = jnp.pad(bc, ((0, 0), (0, NC_PAD - N_CLASSES)))       # (1, 128), kept f32

    if use_bf16:
        # bf16 MXU operands, f32 accumulation (preferred_element_type above).
        x2 = x2.astype(jnp.bfloat16)
        wab = wab.astype(jnp.bfloat16)
        wc_p = wc_p.astype(jnp.bfloat16)

    # Large MXU-aligned row tile; keep >= 2 grid steps when possible so the
    # "parallel" axis can shard across v7x's two TensorCores.
    if M >= 2 * tm:
        tm_eff = tm
    else:
        tm_eff = max(8, _round_up(pl.cdiv(M, 2), 8))
    grid = (pl.cdiv(M, tm_eff),)

    a_out = pl.pallas_call(
        gated_attn_kernel,
        out_shape=jax.ShapeDtypeStruct((M, NC_PAD), jnp.float32),
        grid_spec=pltpu.PrefetchScalarGridSpec(
            num_scalar_prefetch=0,
            grid=grid,
            in_specs=[
                pl.BlockSpec((tm_eff, L), lambda i: (i, 0)),        # x tile
                pl.BlockSpec((L, 2 * D), lambda i: (0, 0)),         # Wa|Wb fused
                pl.BlockSpec((1, 2 * D), lambda i: (0, 0)),         # ba|bb fused
                pl.BlockSpec((D, NC_PAD), lambda i: (0, 0)),        # Wc (padded)
                pl.BlockSpec((1, NC_PAD), lambda i: (0, 0)),        # bc (padded)
            ],
            out_specs=pl.BlockSpec((tm_eff, NC_PAD), lambda i: (i, 0)),
        ),
        compiler_params=pltpu.CompilerParams(
            dimension_semantics=("parallel",),
            vmem_limit_bytes=32 * 1024 * 1024,
        ),
    )(x2, wab, bab, wc_p, bc_p)

    A = a_out[:, :N_CLASSES].reshape(B, N, N_CLASSES)
    # TODO(synk): att=True branch (A.mean(dim=1)) and Dropout(0.25) not exercised
    # since module defaults are att=False, dropout=False.
    return A, x


def init_params(key):
    """Deterministic PyTorch-style Linear init (uniform +/-1/sqrt(fan_in)).
    Weights returned pre-transposed to (in_features, out_features)."""
    ks = jax.random.split(key, 6)
    bound_a = 1.0 / (L ** 0.5)
    bound_c = 1.0 / (D ** 0.5)
    wa = jax.random.uniform(ks[0], (L, D), jnp.float32, -bound_a, bound_a)
    ba = jax.random.uniform(ks[1], (1, D), jnp.float32, -bound_a, bound_a)
    wb = jax.random.uniform(ks[2], (L, D), jnp.float32, -bound_a, bound_a)
    bb = jax.random.uniform(ks[3], (1, D), jnp.float32, -bound_a, bound_a)
    wc = jax.random.uniform(ks[4], (D, N_CLASSES), jnp.float32, -bound_c, bound_c)
    bc = jax.random.uniform(ks[5], (1, N_CLASSES), jnp.float32, -bound_c, bound_c)
    return wa, ba, wb, bb, wc, bc


def reference_forward(x, params):
    wa, ba, wb, bb, wc, bc = params
    a = jnp.tanh(x @ wa + ba)
    b = jax.nn.sigmoid(x @ wb + bb)
    A = (a * b) @ wc + bc
    return A, x


if __name__ == "__main__":
    key = jax.random.PRNGKey(0)
    k_x, k_p = jax.random.split(key)

    B, N = 2, 8   # small bag: M = 16 rows (kernel still uses 2 grid steps)
    x = jax.random.normal(k_x, (B, N, L), jnp.float32)
    params = init_params(k_p)

    A_ref, _ = reference_forward(x, params)

    # Strict-precision path (f32 operands): must match reference tightly.
    A32, x_out = attn_net_gated_forward(x, params, use_bf16=False)
    A32 = jax.block_until_ready(A32)
    x_out = jax.block_until_ready(x_out)
    assert A32.shape == (B, N, N_CLASSES)
    assert x_out.shape == x.shape
    assert jnp.allclose(A32, A_ref, atol=1e-5, rtol=1e-5)

    # Fast path (bf16 MXU operands, f32 accumulation): looser tolerance.
    A16, _ = attn_net_gated_forward(x, params, use_bf16=True)
    A16 = jax.block_until_ready(A16)
    assert A16.shape == (B, N, N_CLASSES)
    assert jnp.allclose(A16, A_ref, atol=2e-2, rtol=2e-2)

    print("KERNEL_OK")
</pallas_src>

<mosaic_0001>
module attributes {stable_mosaic.version = 11 : i64} {
  func.func @gated_attn_kernel(%arg0: i32, %arg1: memref<8x256xf32, #tpu.memory_space<vmem>>, %arg2: memref<256x1024xf32, #tpu.memory_space<vmem>>, %arg3: memref<1x1024xf32, #tpu.memory_space<vmem>>, %arg4: memref<512x128xf32, #tpu.memory_space<vmem>>, %arg5: memref<1x128xf32, #tpu.memory_space<vmem>>, %arg6: memref<8x128xf32, #tpu.memory_space<vmem>>) attributes {dimension_semantics = [#tpu.dimension_semantics<parallel>], iteration_bounds = array<i64: 2>, scalar_prefetch = 0 : i64, scratch_operands = 0 : i64, tpu.core_type = #tpu.core_type<tc>, window_params = [{transform_indices = @transform_0, window_bounds = array<i64: 8, 256>}, {pipeline_mode = #tpu.pipeline_mode<synchronous>, transform_indices = @transform_1, window_bounds = array<i64: 256, 1024>}, {pipeline_mode = #tpu.pipeline_mode<synchronous>, transform_indices = @transform_2, window_bounds = array<i64: 1, 1024>}, {pipeline_mode = #tpu.pipeline_mode<synchronous>, transform_indices = @transform_3, window_bounds = array<i64: 512, 128>}, {pipeline_mode = #tpu.pipeline_mode<synchronous>, transform_indices = @transform_4, window_bounds = array<i64: 1, 128>}, {transform_indices = @transform_5, window_bounds = array<i64: 8, 128>}]} {
    %c0 = arith.constant 0 : index
    %c0_0 = arith.constant 0 : index
    %0 = vector.load %arg1[%c0, %c0_0] : memref<8x256xf32, #tpu.memory_space<vmem>>, vector<8x256xf32>
    %c0_1 = arith.constant 0 : index
    %c0_2 = arith.constant 0 : index
    %1 = vector.load %arg2[%c0_1, %c0_2] : memref<256x1024xf32, #tpu.memory_space<vmem>>, vector<256x1024xf32>
    %cst = arith.constant dense<0.000000e+00> : vector<8x1024xf32>
    %2 = tpu.matmul %0, %1, %cst {dimension_numbers = #tpu.dot_dimension_numbers<[1], [0], [0], [1], [0, 0, 1, 1], [], []>} : vector<8x256xf32>, vector<256x1024xf32>, vector<8x1024xf32> -> vector<8x1024xf32>
    %c0_3 = arith.constant 0 : index
    %c0_4 = arith.constant 0 : index
    %3 = vector.load %arg3[%c0_3, %c0_4] : memref<1x1024xf32, #tpu.memory_space<vmem>>, vector<1x1024xf32>
    %4 = vector.broadcast %3 : vector<1x1024xf32> to vector<8x1024xf32>
    %5 = arith.addf %2, %4 : vector<8x1024xf32>
    %6 = vector.extract_strided_slice %5 {offsets = [0, 0], sizes = [8, 512], strides = [1, 1]} : vector<8x1024xf32> to vector<8x512xf32>
    %7 = math.tanh %6 : vector<8x512xf32>
    %8 = vector.extract_strided_slice %5 {offsets = [0, 512], sizes = [8, 512], strides = [1, 1]} : vector<8x1024xf32> to vector<8x512xf32>
    %9 = arith.negf %8 : vector<8x512xf32>
    %10 = math.exp %9 : vector<8x512xf32>
    %cst_5 = arith.constant 1.000000e+00 : f32
    %11 = vector.broadcast %cst_5 : f32 to vector<8x512xf32>
    %12 = arith.addf %11, %10 : vector<8x512xf32>
    %13 = arith.divf %11, %12 : vector<8x512xf32>
    %14 = arith.mulf %7, %13 : vector<8x512xf32>
    %c0_6 = arith.constant 0 : index
    %c0_7 = arith.constant 0 : index
    %15 = vector.load %arg4[%c0_6, %c0_7] : memref<512x128xf32, #tpu.memory_space<vmem>>, vector<512x128xf32>
    %cst_8 = arith.constant dense<0.000000e+00> : vector<8x128xf32>
    %16 = tpu.matmul %14, %15, %cst_8 {dimension_numbers = #tpu.dot_dimension_numbers<[1], [0], [0], [1], [0, 0, 1, 1], [], []>} : vector<8x512xf32>, vector<512x128xf32>, vector<8x128xf32> -> vector<8x128xf32>
    %c0_9 = arith.constant 0 : index
    %c0_10 = arith.constant 0 : index
    %17 = vector.load %arg5[%c0_9, %c0_10] : memref<1x128xf32, #tpu.memory_space<vmem>>, vector<1x128xf32>
    %18 = vector.broadcast %17 : vector<1x128xf32> to vector<8x128xf32>
    %19 = arith.addf %16, %18 : vector<8x128xf32>
    %c0_11 = arith.constant 0 : index
    %c0_12 = arith.constant 0 : index
    %20 = vector.load %arg6[%c0_11, %c0_12] : memref<8x128xf32, #tpu.memory_space<vmem>>, vector<8x128xf32>
    tpu.vector_store %arg6[%c0_11, %c0_12], %19 {strides = array<i32>} : memref<8x128xf32, #tpu.memory_space<vmem>>, vector<8x128xf32>,
    return
  }
  func.func @transform_0(%arg0: i32) -> (i32, i32) {
    %c0_i32 = arith.constant 0 : i32
    %c0_i32_0 = arith.constant 0 : i32
    return %arg0, %c0_i32 : i32, i32
  }
  func.func @transform_1(%arg0: i32) -> (i32, i32) {
    %c0_i32 = arith.constant 0 : i32
    %c0_i32_0 = arith.constant 0 : i32
    %c0_i32_1 = arith.constant 0 : i32
    return %c0_i32, %c0_i32_0 : i32, i32
  }
  func.func @transform_2(%arg0: i32) -> (i32, i32) {
    %c0_i32 = arith.constant 0 : i32
    %c0_i32_0 = arith.constant 0 : i32
    %c0_i32_1 = arith.constant 0 : i32
    return %c0_i32, %c0_i32_0 : i32, i32
  }
  func.func @transform_3(%arg0: i32) -> (i32, i32) {
    %c0_i32 = arith.constant 0 : i32
    %c0_i32_0 = arith.constant 0 : i32
    %c0_i32_1 = arith.constant 0 : i32
    return %c0_i32, %c0_i32_0 : i32, i32
  }
  func.func @transform_4(%arg0: i32) -> (i32, i32) {
    %c0_i32 = arith.constant 0 : i32
    %c0_i32_0 = arith.constant 0 : i32
    %c0_i32_1 = arith.constant 0 : i32
    return %c0_i32, %c0_i32_0 : i32, i32
  }
  func.func @transform_5(%arg0: i32) -> (i32, i32) {
    %c0_i32 = arith.constant 0 : i32
    %c0_i32_0 = arith.constant 0 : i32
    return %arg0, %c0_i32 : i32, i32
  }
}

</mosaic_0001>

<bundles_post_ra>
// kernel: tpu_custom_call.1
= control target key start
LH: loop header
LB: loop body
LE: loop exit
PB: predicated region body
PF: predicated region fallthrough
CT: control target
= control target key end

     0   :  { %10 = vsyncpa [#allocation3], 0  ;;  %s1844_s0 = inlined_call_operand.hbm [shape: f32[16,256], index: 0, kind: input, shape index: {}]   ;;  %s1845_s1 = inlined_call_operand.hbm [shape: f32[256,1024], index: 1, kind: input, shape index: {}]   ;;  %s1846_s2 = inlined_call_operand.hbm [shape: f32[1,1024], index: 2, kind: input, shape index: {}]   ;;  %s1847_s3 = inlined_call_operand.hbm [shape: f32[512,128], index: 3, kind: input, shape index: {}]   ;;  %s1848_s4 = inlined_call_operand.vmem [shape: f32[1,128], index: 4, kind: input, shape index: {}]   ;;  %s1849_s5 = inlined_call_operand.hbm [shape: f32[16,128], index: 5, kind: output, shape index: {}]  }
   0x1   :  { %12 = vsyncpa [#allocation3 + $0x1], 0 }
   0x2   :  { %13 = vsyncpa [#allocation6], 0 }
   0x3   :  { %14 = vsyncpa [#allocation9], 0 }
   0x4   :  { %15 = vsyncpa [#allocation4], 0 }
   0x5   :  { %17 = vsyncpa [#allocation4 + $0x1], 0  ;;  %s1598_s18 = smov 0   ;;  %s1600_s19 = smov 0  }
   0x6   :  { %s1602_s20 = smov 0   ;;  %s1604_s21 = smov 0  }
   0x7 LB: > { %s175_s24 = sshll.u32 %s1845_s1, 4  ;;  %s1622_s25 = sadd.s32 4294967295, %s1559_s21   ;;  %s1559_s21 = sphi %s1604_s21, %s1866_s21   ;;  %s1555_s20 = sphi %s1602_s20, %s1865_s20   ;;  %s1551_s19 = sphi %s1600_s19, %s1864_s19   ;;  %s1547_s18 = sphi %s1598_s18, %s1863_s18   ;;  %s176_s24 = int_to_ptr.hbm [resolvable:$true] %s175_s24 }
   0x8   : > { %p1236_p0 = scmp.ge.s32.totalorder %s1559_s21, 1  ;;  %p44_p1 = scmp.eq.s32.totalorder %s1622_s25, 0 }
   0x9   : > { %p164_p2 = scmp.lt.s32.totalorder %s1559_s21, 3  ;;  %s1561_s27 = smov [#allocation5]  }
   0xa   : > { %s177_s28 = sshll.u32 %s1561_s27, 4  ;;  %s190_s6 = sshll.u32 %s1846_s2, 4  ;;  %s178_s28 = int_to_ptr.vmem [resolvable:$true] %s177_s28  ;;  %s191_s6 = int_to_ptr.hbm [resolvable:$true] %s190_s6 }
   0xb   : > { %p1627_p3 = pnand %p1236_p0, %p164_p2  ;;  %s201_s10 = sshll.u32 %s1847_s3, 4  ;;  %s202_s10 = int_to_ptr.hbm [resolvable:$true] %s201_s10 }
   0xc   : > { %s1562_s11 = smov [#allocation7]   ;;  %s1563_s13 = smov 1024  }
   0xd   : > { %p1275_p4 = pneg %p1627_p3  ;;  %s192_s12 = sshll.u32 %s1562_s11, 4  ;;  %s193_s12 = int_to_ptr.vmem [resolvable:$true] %s192_s12 }
   0xe   : > { %s1564_s14 = smov 64   ;;  %s1565_s15 = smov [#allocation8]  }
   0xf   : > { %p1639_p6 = pnand %p1275_p4, %p44_p1  ;;  %s203_s16 = sshll.u32 %s1565_s15, 4  ;;  %s204_s16 = int_to_ptr.vmem [resolvable:$true] %s203_s16 }
  0x10   : > { %s1566_s17 = smov 128   ;;  %s1567_s22 = smov 8  }
  0x11   : > { %1278 = dma.hbm_to_vmem [thread:$0]  (!%p1639_p6), %s176_s24, 32768, %s178_s28, [#allocation6], %s1563_s13, %s1563_s13, %s1564_s14  }
  0x12   : > { %1281 = dma.hbm_to_vmem [thread:$0]  (!%p1639_p6), %s191_s6, 128, %s193_s12, [#allocation6]  }
  0x13   : > { %1284 = dma.hbm_to_vmem [thread:$0]  (!%p1639_p6), %s202_s10, 8192, %s204_s16, [#allocation9], %s1566_s17, %s1566_s17, %s1567_s22  }
  0x14   : > { %s1235_s23 = sadd.s32 4294967294, %s1559_s21   ;;  %s1654_s24 = sadd.s32 1, %s1559_s21  }
  0x15   : > { %s30_s27 = sadd.s32 1, %s1555_s20  ;;  %s27_s28 = ssub.s32 %s1559_s21, %s1654_s24 }
  0x16   : > { %p37_p7 = scmp.ne.s32.totalorder %s1555_s20, %s1551_s19  ;;  %p28_p8 = scmp.eq.s32.totalorder %s27_s28, 0 }
  0x17   : > { %p38_p9 = scmp.eq.s32.totalorder %s1559_s21, 0  ;;  %p43_p10 = scmp.ne.s32.totalorder %s1551_s19, %s1547_s18 }
  0x18   : > { %p151_p11 = scmp.eq.s32.totalorder %s1622_s25, 1  ;;  %p157_p0 = scmp.eq.s32.totalorder %s1235_s23, 1 }
  0x19   : > { %s1666_s29 = scalar_select %p28_p8, %s1555_s20, %s30_s27  }
  0x1a   : > { %p1670_p12 = por %p44_p1, %p43_p10  ;;  %p1674_p13 = por %p151_p11, %p37_p7 }
  0x1b   : > { %p39_p2 = por %p38_p9, %p37_p7  ;;  %s220_s7 = sand.u32 1, %s1555_s20  }
  0x1c   : > { %p1679_p4 = por %p157_p0, %p43_p10  ;;  %p1296_p6 = scmp.lt.s32.totalorder %s1559_s21, 2 }
  0x1d   : > { %s1241_s9 = sshll.u32 %s220_s7, 4  ;;  %s1258_s10 = sshll.u32 %s1559_s21, 4 }
  0x1e   : > { %s229_s13 = scalar_lea.hbm %s1844_s0, %s1258_s10  ;;  %s224_s15 = scalar_lea.vmem [#allocation2], %s1241_s9 }
  0x1f   : > { %s231_s14 = sshll.u32 %s229_s13, 4  ;;  %s233_s16 = sshll.u32 %s224_s15, 4  ;;  %s232_s14 = int_to_ptr.hbm [resolvable:$true] %s231_s14  ;;  %s234_s16 = int_to_ptr.vmem [resolvable:$true] %s233_s16 }
  0x20   : > { %p1688_p8 = pnand %p1296_p6, %p39_p2  ;;  %s221_s22 = scalar_lea.sflag [#allocation3], %s220_s7 }
  0x21   : > { %s1455_s23 = sshra.s32 %s232_s14, 4  ;;  %s1462_s9 = scalar_lea.hbm %s1844_s0, 32  ;;  %s1456_s23 = int_to_ptr.hbm [resolvable:$true] %s1455_s23 }
  0x22   : > { %s1457_s27 = scalar_lea.hbm %s1456_s23, 16  ;;  %p1459_p9 = pneg %p1688_p8 }
  0x23   : > { %p1458_p7 = scmp.ne.s32.totalorder %s1456_s23, %s1457_s27  ;;  %p1463_p0 = scmp.lt.s32.totalorder %s1456_s23, %s1844_s0 }
  0x24   : > { %p1464_p2 = scmp.lt.s32.totalorder %s1462_s9, %s1457_s27 }
  0x25   : > { %p1460_p10 = pnand %p1459_p9, %p1458_p7 }
  0x26   : > { %p1465_p6 = por %p1464_p2, %p1463_p0 }
  0x27   : > { %p1461_p11 = pneg %p1460_p10 }
  0x29   : > { %p1466_p5 = pnand %p1465_p6, %p1461_p11 }
  0x2b   : > { %1469 = shalt.err (!%p1466_p5)
}
  0x2c   : > { %1288 = dma.hbm_to_vmem [thread:$0]  (!%p1688_p8), %s232_s14, 256, %s234_s16, %s221_s22  }
  0x2d   : > { %242 = sbr.rel (%p1627_p3) target bundleno = 493 (0x1ed), region = 40  ;;  %s1705_s7 = sand.u32 (!%p1627_p3), 1, %s1551_s19  }
  0x2e   : > { %s1245_s13 = sshll.u32 (!%p1627_p3), %s1705_s7, 4  ;;  %s245_s15 = scalar_lea.sflag (!%p1627_p3), [#allocation3], %s1705_s7 }
  0x2f   : > { %s1709_s28 = scalar_lea.vmem (!%p1627_p3), [#allocation2], %s1245_s13 }
  0x32   : > { %1530 = dma.done.wait (%p1670_p12), %s245_s15, 256  }
  0x33   : > { %1532 = vsyncadd (%p1670_p12), %s245_s15, 4294967040 }
  0x34   : > { %1534 = dma.done.wait (%p44_p1), [#allocation6], 32896  }
  0x35   : > { %1536 = vsyncadd (%p44_p1), [#allocation6], 4294934400 }
  0x36   : > { %1538 = dma.done.wait (%p44_p1), [#allocation9], 8192  }
  0x37   : > { %1540 = vsyncadd (%p44_p1), [#allocation9], 4294959104  ;;  %v413_v0 = vld [vmem:[#allocation5 + $0x3c0] sm:$0xff]  ;;  %v414_v1 = vld [vmem:[#allocation5 + $0x3c8] sm:$0xff]  ;;  %s1249_s14 = sshll.u32 %s1705_s7, 3  ;;  %s1255_s16 = sshll.u32 %s1622_s25, 3 }
  0x38   : > { %v405_v2 = vld [vmem:[#allocation5 + $0x380] sm:$0xff]  ;;  %567 = vmatpush.msra.mxu0 %v413_v0  ;;  %607 = vmatpush.msra.mxu2 %v414_v1  ;;  %v406_v4 = vld [vmem:[#allocation5 + $0x388] sm:$0xff]  ;;  %v415_v62 = vld [vmem:[#allocation5 + $0x3d0] sm:$0xff]  ;;  %s1131_s23 = scalar_lea.hbm %s1849_s5, %s1255_s16  ;;  %s290_s27 = scalar_lea.vmem [#allocation10], %s1249_s14 }
  0x39   : > { %v541_v3 = vld [vmem:[#allocation5 + $0x7c0] sm:$0xff]  ;;  %v542_v5 = vld [vmem:[#allocation5 + $0x7c8] sm:$0xff]  ;;  %v416_v63 = vld [vmem:[#allocation5 + $0x3d8] sm:$0xff]  ;;  %s1133_s10 = sshll.u32 %s290_s27, 4  ;;  %s1135_s9 = sshll.u32 %s1131_s23, 4  ;;  %s1134_s10 = int_to_ptr.vmem [resolvable:$true] %s1133_s10  ;;  %s1136_s9 = int_to_ptr.hbm [resolvable:$true] %s1135_s9 }
  0x3a   : > { %587 = vmatpush.msra.mxu1 %v541_v3  ;;  %627 = vmatpush.msra.mxu3 %v542_v5  ;;  %v397_v6 = vld [vmem:[#allocation5 + $0x340] sm:$0xff]  ;;  %v398_v8 = vld [vmem:[#allocation5 + $0x348] sm:$0xff]  ;;  %v543_v3 = vld [vmem:[#allocation5 + $0x7d0] sm:$0xff]  ;;  %s1121_s11 = scalar_lea.sflag [#allocation4], %s1705_s7  ;;  %s1499_s25 = sshra.s32 %s1136_s9, 4  ;;  %s1500_s25 = int_to_ptr.hbm [resolvable:$true] %s1499_s25 }
  0x3b   : > { %v533_v7 = vld [vmem:[#allocation5 + $0x780] sm:$0xff]  ;;  %568 = vmatpush.msra.mxu0 %v405_v2  ;;  %608 = vmatpush.msra.mxu2 %v406_v4  ;;  %v534_v9 = vld [vmem:[#allocation5 + $0x788] sm:$0xff]  ;;  %v407_v2 = vld [vmem:[#allocation5 + $0x390] sm:$0xff]  ;;  %s1501_s12 = scalar_lea.hbm %s1500_s25, 8  ;;  %p1506_p12 = scmp.lt.s32.totalorder %s1500_s25, %s1849_s5 }
  0x3c   : > { %v525_v10 = vld [vmem:[#allocation5 + $0x740] sm:$0xff]  ;;  %588 = vmatpush.msra.mxu1 %v533_v7  ;;  %628 = vmatpush.msra.mxu3 %v534_v9  ;;  %v390_v12 = vld [vmem:[#allocation5 + $0x308] sm:$0xff]  ;;  %v408_v4 = vld [vmem:[#allocation5 + $0x398] sm:$0xff]  ;;  %p1502_p1 = scmp.ne.s32.totalorder %s1500_s25, %s1501_s12 }
  0x3d   : > { %v389_v11 = vld [vmem:[#allocation5 + $0x300] sm:$0xff]  ;;  %v526_v13 = vld [vmem:[#allocation5 + $0x748] sm:$0xff]  ;;  %569 = vmatpush.msra.mxu0 %v397_v6  ;;  %609 = vmatpush.msra.mxu2 %v398_v8  ;;  %v544_v5 = vld [vmem:[#allocation5 + $0x7d8] sm:$0xff] }
  0x3e   : > { %v517_v14 = vld [vmem:[#allocation5 + $0x700] sm:$0xff]  ;;  %v518_v15 = vld [vmem:[#allocation5 + $0x708] sm:$0xff]  ;;  %589 = vmatpush.msra.mxu1 %v525_v10  ;;  %629 = vmatpush.msra.mxu3 %v526_v13  ;;  %v399_v6 = vld [vmem:[#allocation5 + $0x350] sm:$0xff]  ;;  %p1503_p3 = pnand %p1502_p1, %p1674_p13 }
  0x3f   : > { %v381_v16 = vld [vmem:[#allocation5 + $0x2c0] sm:$0xff]  ;;  %v382_v17 = vld [vmem:[#allocation5 + $0x2c8] sm:$0xff]  ;;  %570 = vmatpush.msra.mxu0 %v389_v11  ;;  %610 = vmatpush.msra.mxu2 %v390_v12  ;;  %v535_v7 = vld [vmem:[#allocation5 + $0x790] sm:$0xff] }
  0x40   : > { %v509_v18 = vld [vmem:[#allocation5 + $0x6c0] sm:$0xff]  ;;  %v510_v19 = vld [vmem:[#allocation5 + $0x6c8] sm:$0xff]  ;;  %590 = vmatpush.msra.mxu1 %v517_v14  ;;  %630 = vmatpush.msra.mxu3 %v518_v15  ;;  %v400_v8 = vld [vmem:[#allocation5 + $0x358] sm:$0xff]  ;;  %p1504_p5 = pneg %p1503_p3 }
  0x41   : > { %v373_v20 = vld [vmem:[#allocation5 + $0x280] sm:$0xff]  ;;  %v374_v21 = vld [vmem:[#allocation5 + $0x288] sm:$0xff]  ;;  %571 = vmatpush.msra.mxu0 %v381_v16  ;;  %611 = vmatpush.msra.mxu2 %v382_v17  ;;  %v536_v9 = vld [vmem:[#allocation5 + $0x798] sm:$0xff] }
  0x42   : > { %v501_v22 = vld [vmem:[#allocation5 + $0x680] sm:$0xff]  ;;  %v502_v23 = vld [vmem:[#allocation5 + $0x688] sm:$0xff]  ;;  %591 = vmatpush.msra.mxu1 %v509_v18  ;;  %631 = vmatpush.msra.mxu3 %v510_v19  ;;  %v391_v10 = vld [vmem:[#allocation5 + $0x310] sm:$0xff] }
  0x43   : > { %v365_v24 = vld [vmem:[#allocation5 + $0x240] sm:$0xff]  ;;  %v366_v25 = vld [vmem:[#allocation5 + $0x248] sm:$0xff]  ;;  %572 = vmatpush.msra.mxu0 %v373_v20  ;;  %612 = vmatpush.msra.mxu2 %v374_v21  ;;  %v527_v11 = vld [vmem:[#allocation5 + $0x750] sm:$0xff] }
  0x44   : > { %v493_v26 = vld [vmem:[#allocation5 + $0x640] sm:$0xff]  ;;  %v494_v27 = vld [vmem:[#allocation5 + $0x648] sm:$0xff]  ;;  %592 = vmatpush.msra.mxu1 %v501_v22  ;;  %632 = vmatpush.msra.mxu3 %v502_v23  ;;  %v392_v12 = vld [vmem:[#allocation5 + $0x318] sm:$0xff] }
  0x45   : > { %v357_v28 = vld [vmem:[#allocation5 + $0x200] sm:$0xff]  ;;  %v358_v29 = vld [vmem:[#allocation5 + $0x208] sm:$0xff]  ;;  %573 = vmatpush.msra.mxu0 %v365_v24  ;;  %613 = vmatpush.msra.mxu2 %v366_v25  ;;  %v528_v13 = vld [vmem:[#allocation5 + $0x758] sm:$0xff] }
  0x46   : > { %v485_v30 = vld [vmem:[#allocation5 + $0x600] sm:$0xff]  ;;  %v486_v31 = vld [vmem:[#allocation5 + $0x608] sm:$0xff]  ;;  %593 = vmatpush.msra.mxu1 %v493_v26  ;;  %633 = vmatpush.msra.mxu3 %v494_v27  ;;  %v383_v14 = vld [vmem:[#allocation5 + $0x2d0] sm:$0xff] }
  0x47   : > { %v349_v32 = vld [vmem:[#allocation5 + $0x1c0] sm:$0xff]  ;;  %v350_v33 = vld [vmem:[#allocation5 + $0x1c8] sm:$0xff]  ;;  %574 = vmatpush.msra.mxu0 %v357_v28  ;;  %614 = vmatpush.msra.mxu2 %v358_v29  ;;  %v519_v15 = vld [vmem:[#allocation5 + $0x710] sm:$0xff] }
  0x48   : > { %v477_v34 = vld [vmem:[#allocation5 + $0x5c0] sm:$0xff]  ;;  %v478_v35 = vld [vmem:[#allocation5 + $0x5c8] sm:$0xff]  ;;  %594 = vmatpush.msra.mxu1 %v485_v30  ;;  %634 = vmatpush.msra.mxu3 %v486_v31  ;;  %v384_v16 = vld [vmem:[#allocation5 + $0x2d8] sm:$0xff] }
  0x49   : > { %v341_v36 = vld [vmem:[#allocation5 + $0x180] sm:$0xff]  ;;  %v342_v37 = vld [vmem:[#allocation5 + $0x188] sm:$0xff]  ;;  %575 = vmatpush.msra.mxu0 %v349_v32  ;;  %615 = vmatpush.msra.mxu2 %v350_v33  ;;  %v520_v17 = vld [vmem:[#allocation5 + $0x718] sm:$0xff] }
  0x4a   : > { %v469_v38 = vld [vmem:[#allocation5 + $0x580] sm:$0xff]  ;;  %v470_v39 = vld [vmem:[#allocation5 + $0x588] sm:$0xff]  ;;  %595 = vmatpush.msra.mxu1 %v477_v34  ;;  %635 = vmatpush.msra.mxu3 %v478_v35  ;;  %v375_v18 = vld [vmem:[#allocation5 + $0x290] sm:$0xff] }
  0x4b   : > { %v333_v40 = vld [vmem:[#allocation5 + $0x140] sm:$0xff]  ;;  %v334_v41 = vld [vmem:[#allocation5 + $0x148] sm:$0xff]  ;;  %576 = vmatpush.msra.mxu0 %v341_v36  ;;  %616 = vmatpush.msra.mxu2 %v342_v37  ;;  %v511_v19 = vld [vmem:[#allocation5 + $0x6d0] sm:$0xff] }
  0x4c   : > { %v461_v42 = vld [vmem:[#allocation5 + $0x540] sm:$0xff]  ;;  %v462_v43 = vld [vmem:[#allocation5 + $0x548] sm:$0xff]  ;;  %596 = vmatpush.msra.mxu1 %v469_v38  ;;  %636 = vmatpush.msra.mxu3 %v470_v39  ;;  %v376_v20 = vld [vmem:[#allocation5 + $0x298] sm:$0xff] }
  0x4d   : > { %v325_v44 = vld [vmem:[#allocation5 + $0x100] sm:$0xff]  ;;  %v326_v45 = vld [vmem:[#allocation5 + $0x108] sm:$0xff]  ;;  %577 = vmatpush.msra.mxu0 %v333_v40  ;;  %617 = vmatpush.msra.mxu2 %v334_v41  ;;  %v512_v21 = vld [vmem:[#allocation5 + $0x6d8] sm:$0xff] }
  0x4e   : > { %v453_v46 = vld [vmem:[#allocation5 + $0x500] sm:$0xff]  ;;  %v454_v47 = vld [vmem:[#allocation5 + $0x508] sm:$0xff]  ;;  %597 = vmatpush.msra.mxu1 %v461_v42  ;;  %637 = vmatpush.msra.mxu3 %v462_v43  ;;  %v367_v22 = vld [vmem:[#allocation5 + $0x250] sm:$0xff] }
  0x4f   : > { %v317_v48 = vld [vmem:[#allocation5 + $0xc0] sm:$0xff]  ;;  %v318_v49 = vld [vmem:[#allocation5 + $0xc8] sm:$0xff]  ;;  %578 = vmatpush.msra.mxu0 %v325_v44  ;;  %618 = vmatpush.msra.mxu2 %v326_v45  ;;  %v503_v23 = vld [vmem:[#allocation5 + $0x690] sm:$0xff] }
  0x50   : > { %v445_v50 = vld [vmem:[#allocation5 + $0x4c0] sm:$0xff]  ;;  %v446_v51 = vld [vmem:[#allocation5 + $0x4c8] sm:$0xff]  ;;  %598 = vmatpush.msra.mxu1 %v453_v46  ;;  %638 = vmatpush.msra.mxu3 %v454_v47  ;;  %v368_v24 = vld [vmem:[#allocation5 + $0x258] sm:$0xff] }
  0x51   : > { %v309_v52 = vld [vmem:[#allocation5 + $0x80] sm:$0xff]  ;;  %v310_v53 = vld [vmem:[#allocation5 + $0x88] sm:$0xff]  ;;  %579 = vmatpush.msra.mxu0 %v317_v48  ;;  %619 = vmatpush.msra.mxu2 %v318_v49  ;;  %v504_v25 = vld [vmem:[#allocation5 + $0x698] sm:$0xff] }
  0x52   : > { %v437_v54 = vld [vmem:[#allocation5 + $0x480] sm:$0xff]  ;;  %v438_v55 = vld [vmem:[#allocation5 + $0x488] sm:$0xff]  ;;  %599 = vmatpush.msra.mxu1 %v445_v50  ;;  %639 = vmatpush.msra.mxu3 %v446_v51  ;;  %v359_v26 = vld [vmem:[#allocation5 + $0x210] sm:$0xff] }
  0x53   : > { %v301_v56 = vld [vmem:[#allocation5 + $0x40] sm:$0xff]  ;;  %v302_v57 = vld [vmem:[#allocation5 + $0x48] sm:$0xff]  ;;  %580 = vmatpush.msra.mxu0 %v309_v52  ;;  %620 = vmatpush.msra.mxu2 %v310_v53  ;;  %v495_v27 = vld [vmem:[#allocation5 + $0x650] sm:$0xff] }
  0x54   : > { %v429_v58 = vld [vmem:[#allocation5 + $0x440] sm:$0xff]  ;;  %v430_v59 = vld [vmem:[#allocation5 + $0x448] sm:$0xff]  ;;  %600 = vmatpush.msra.mxu1 %v437_v54  ;;  %640 = vmatpush.msra.mxu3 %v438_v55  ;;  %v360_v28 = vld [vmem:[#allocation5 + $0x218] sm:$0xff] }
  0x55   : > { %v293_v60 = vld [vmem:[#allocation5] sm:$0xff]  ;;  %v294_v61 = vld [vmem:[#allocation5 + $0x8] sm:$0xff]  ;;  %581 = vmatpush.msra.mxu0 %v301_v56  ;;  %621 = vmatpush.msra.mxu2 %v302_v57  ;;  %v496_v29 = vld [vmem:[#allocation5 + $0x658] sm:$0xff] }
  0x56   : > { %601 = vmatpush.msra.mxu1 %v429_v58  ;;  %641 = vmatpush.msra.mxu3 %v430_v59  ;;  %v421_v0 = vld [vmem:[#allocation5 + $0x400] sm:$0xff]  ;;  %v422_v1 = vld [vmem:[#allocation5 + $0x408] sm:$0xff]  ;;  %v351_v30 = vld [vmem:[#allocation5 + $0x1d0] sm:$0xff] }
  0x57   : > { %582 = vmatpush.msra.mxu0 %v293_v60  ;;  %622 = vmatpush.msra.mxu2 %v294_v61  ;;  %v487_v31 = vld [vmem:[#allocation5 + $0x610] sm:$0xff]  ;;  %v352_v32 = vld [vmem:[#allocation5 + $0x1d8] sm:$0xff] }
  0x58   : > { %602 = vmatpush.msra.mxu1 %v421_v0  ;;  %642 = vmatpush.msra.mxu3 %v422_v1  ;;  %v488_v33 = vld [vmem:[#allocation5 + $0x618] sm:$0xff]  ;;  %v343_v34 = vld [vmem:[#allocation5 + $0x190] sm:$0xff]  ;;  %v418_v0 = vld [vmem:[#allocation5 + $0x3e8] sm:$0xff] }
  0x59   : > { %647 = vmatpush.msrb.mxu0 %v415_v62  ;;  %687 = vmatpush.msrb.mxu2 %v416_v63  ;;  %v479_v35 = vld [vmem:[#allocation5 + $0x5d0] sm:$0xff]  ;;  %v344_v36 = vld [vmem:[#allocation5 + $0x198] sm:$0xff]  ;;  %v417_v63 = vld [vmem:[#allocation5 + $0x3e0] sm:$0xff] }
  0x5a   : > { %667 = vmatpush.msrb.mxu1 %v543_v3  ;;  %707 = vmatpush.msrb.mxu3 %v544_v5  ;;  %v480_v37 = vld [vmem:[#allocation5 + $0x5d8] sm:$0xff]  ;;  %v335_v38 = vld [vmem:[#allocation5 + $0x150] sm:$0xff]  ;;  %v545_v5 = vld [vmem:[#allocation5 + $0x7e0] sm:$0xff] }
  0x5b   : > { %648 = vmatpush.msrb.mxu0 %v407_v2  ;;  %688 = vmatpush.msrb.mxu2 %v408_v4  ;;  %v471_v39 = vld [vmem:[#allocation5 + $0x590] sm:$0xff]  ;;  %v336_v40 = vld [vmem:[#allocation5 + $0x158] sm:$0xff]  ;;  %v409_v4 = vld [vmem:[#allocation5 + $0x3a0] sm:$0xff] }
  0x5c   : > { %668 = vmatpush.msrb.mxu1 %v535_v7  ;;  %708 = vmatpush.msrb.mxu3 %v536_v9  ;;  %v472_v41 = vld [vmem:[#allocation5 + $0x598] sm:$0xff]  ;;  %v327_v42 = vld [vmem:[#allocation5 + $0x110] sm:$0xff]  ;;  %v546_v7 = vld [vmem:[#allocation5 + $0x7e8] sm:$0xff] }
  0x5d   : > { %649 = vmatpush.msrb.mxu0 %v399_v6  ;;  %689 = vmatpush.msrb.mxu2 %v400_v8  ;;  %v463_v43 = vld [vmem:[#allocation5 + $0x550] sm:$0xff]  ;;  %v328_v44 = vld [vmem:[#allocation5 + $0x118] sm:$0xff]  ;;  %v410_v6 = vld [vmem:[#allocation5 + $0x3a8] sm:$0xff] }
  0x5e   : > { %669 = vmatpush.msrb.mxu1 %v527_v11  ;;  %709 = vmatpush.msrb.mxu3 %v528_v13  ;;  %v464_v45 = vld [vmem:[#allocation5 + $0x558] sm:$0xff]  ;;  %v319_v46 = vld [vmem:[#allocation5 + $0xd0] sm:$0xff]  ;;  %v401_v8 = vld [vmem:[#allocation5 + $0x360] sm:$0xff] }
  0x5f   : > { %650 = vmatpush.msrb.mxu0 %v391_v10  ;;  %690 = vmatpush.msrb.mxu2 %v392_v12  ;;  %v455_v47 = vld [vmem:[#allocation5 + $0x510] sm:$0xff]  ;;  %v320_v48 = vld [vmem:[#allocation5 + $0xd8] sm:$0xff]  ;;  %v537_v9 = vld [vmem:[#allocation5 + $0x7a0] sm:$0xff] }
  0x60   : > { %670 = vmatpush.msrb.mxu1 %v519_v15  ;;  %710 = vmatpush.msrb.mxu3 %v520_v17  ;;  %v456_v49 = vld [vmem:[#allocation5 + $0x518] sm:$0xff]  ;;  %v311_v50 = vld [vmem:[#allocation5 + $0x90] sm:$0xff]  ;;  %v402_v10 = vld [vmem:[#allocation5 + $0x368] sm:$0xff] }
  0x61   : > { %651 = vmatpush.msrb.mxu0 %v383_v14  ;;  %691 = vmatpush.msrb.mxu2 %v384_v16  ;;  %v447_v51 = vld [vmem:[#allocation5 + $0x4d0] sm:$0xff]  ;;  %v312_v52 = vld [vmem:[#allocation5 + $0x98] sm:$0xff]  ;;  %v538_v11 = vld [vmem:[#allocation5 + $0x7a8] sm:$0xff] }
  0x62   : > { %671 = vmatpush.msrb.mxu1 %v511_v19  ;;  %711 = vmatpush.msrb.mxu3 %v512_v21  ;;  %v448_v53 = vld [vmem:[#allocation5 + $0x4d8] sm:$0xff]  ;;  %v303_v54 = vld [vmem:[#allocation5 + $0x50] sm:$0xff]  ;;  %v393_v12 = vld [vmem:[#allocation5 + $0x320] sm:$0xff] }
  0x63   : > { %652 = vmatpush.msrb.mxu0 %v375_v18  ;;  %692 = vmatpush.msrb.mxu2 %v376_v20  ;;  %v439_v55 = vld [vmem:[#allocation5 + $0x490] sm:$0xff]  ;;  %v304_v56 = vld [vmem:[#allocation5 + $0x58] sm:$0xff]  ;;  %v529_v13 = vld [vmem:[#allocation5 + $0x760] sm:$0xff] }
  0x64   : > { %672 = vmatpush.msrb.mxu1 %v503_v23  ;;  %712 = vmatpush.msrb.mxu3 %v504_v25  ;;  %v440_v57 = vld [vmem:[#allocation5 + $0x498] sm:$0xff]  ;;  %v295_v58 = vld [vmem:[#allocation5 + $0x10] sm:$0xff]  ;;  %v394_v14 = vld [vmem:[#allocation5 + $0x328] sm:$0xff] }
  0x65   : > { %653 = vmatpush.msrb.mxu0 %v367_v22  ;;  %693 = vmatpush.msrb.mxu2 %v368_v24  ;;  %v431_v59 = vld [vmem:[#allocation5 + $0x450] sm:$0xff]  ;;  %v296_v60 = vld [vmem:[#allocation5 + $0x18] sm:$0xff]  ;;  %v530_v15 = vld [vmem:[#allocation5 + $0x768] sm:$0xff] }
  0x66   : > { %673 = vmatpush.msrb.mxu1 %v495_v27  ;;  %713 = vmatpush.msrb.mxu3 %v496_v29  ;;  %v432_v61 = vld [vmem:[#allocation5 + $0x458] sm:$0xff]  ;;  %v1724_v62 = vld [vmem:[%s1709_s28] sm:$0xff]  ;;  %v386_v18 = vld [vmem:[#allocation5 + $0x2e8] sm:$0xff] }
  0x67   : > { %654 = vmatpush.msrb.mxu0 %v359_v26  ;;  %694 = vmatpush.msrb.mxu2 %v360_v28  ;;  %v423_v1 = vld [vmem:[#allocation5 + $0x410] sm:$0xff]  ;;  %v424_v2 = vld [vmem:[#allocation5 + $0x418] sm:$0xff]  ;;  %v385_v16 = vld [vmem:[#allocation5 + $0x2e0] sm:$0xff] }
  0x68   : > { %674 = vmatpush.msrb.mxu1 %v487_v31  ;;  %714 = vmatpush.msrb.mxu3 %v488_v33  ;;  %v1729_v3 = vld [vmem:[%s1709_s28 + $0x8] sm:$0xff]  ;;  %v521_v17 = vld [vmem:[#allocation5 + $0x720] sm:$0xff]  ;;  %s1505_s28 = scalar_lea.hbm %s1849_s5, 16 }
  0x69   : > { %655 = vmatpush.msrb.mxu0 %v351_v30  ;;  %695 = vmatpush.msrb.mxu2 %v352_v32  ;;  %v522_v19 = vld [vmem:[#allocation5 + $0x728] sm:$0xff]  ;;  %v377_v20 = vld [vmem:[#allocation5 + $0x2a0] sm:$0xff]  ;;  %p1507_p8 = scmp.lt.s32.totalorder %s1505_s28, %s1501_s12 }
  0x6a   : > { %675 = vmatpush.msrb.mxu1 %v479_v35  ;;  %715 = vmatpush.msrb.mxu3 %v480_v37  ;;  %v513_v21 = vld [vmem:[#allocation5 + $0x6e0] sm:$0xff]  ;;  %v378_v22 = vld [vmem:[#allocation5 + $0x2a8] sm:$0xff] }
  0x6b   : > { %656 = vmatpush.msrb.mxu0 %v343_v34  ;;  %696 = vmatpush.msrb.mxu2 %v344_v36  ;;  %v514_v23 = vld [vmem:[#allocation5 + $0x6e8] sm:$0xff]  ;;  %v369_v24 = vld [vmem:[#allocation5 + $0x260] sm:$0xff]  ;;  %p1508_p7 = por %p1507_p8, %p1506_p12 }
  0x6c   : > { %676 = vmatpush.msrb.mxu1 %v471_v39  ;;  %716 = vmatpush.msrb.mxu3 %v472_v41  ;;  %v505_v25 = vld [vmem:[#allocation5 + $0x6a0] sm:$0xff]  ;;  %v370_v26 = vld [vmem:[#allocation5 + $0x268] sm:$0xff] }
  0x6d   : > { %657 = vmatpush.msrb.mxu0 %v335_v38  ;;  %697 = vmatpush.msrb.mxu2 %v336_v40  ;;  %v506_v27 = vld [vmem:[#allocation5 + $0x6a8] sm:$0xff]  ;;  %v361_v28 = vld [vmem:[#allocation5 + $0x220] sm:$0xff]  ;;  %p1509_p9 = pnand %p1508_p7, %p1504_p5 }
  0x6e   : > { %677 = vmatpush.msrb.mxu1 %v463_v43  ;;  %717 = vmatpush.msrb.mxu3 %v464_v45  ;;  %v497_v29 = vld [vmem:[#allocation5 + $0x660] sm:$0xff]  ;;  %v362_v30 = vld [vmem:[#allocation5 + $0x228] sm:$0xff] }
  0x6f   : > { %658 = vmatpush.msrb.mxu0 %v327_v42  ;;  %698 = vmatpush.msrb.mxu2 %v328_v44  ;;  %v498_v31 = vld [vmem:[#allocation5 + $0x668] sm:$0xff]  ;;  %v353_v32 = vld [vmem:[#allocation5 + $0x1e0] sm:$0xff] }
  0x70   : > { %678 = vmatpush.msrb.mxu1 %v455_v47  ;;  %718 = vmatpush.msrb.mxu3 %v456_v49  ;;  %v489_v33 = vld [vmem:[#allocation5 + $0x620] sm:$0xff]  ;;  %v354_v34 = vld [vmem:[#allocation5 + $0x1e8] sm:$0xff] }
  0x71   : > { %659 = vmatpush.msrb.mxu0 %v319_v46  ;;  %699 = vmatpush.msrb.mxu2 %v320_v48  ;;  %v490_v35 = vld [vmem:[#allocation5 + $0x628] sm:$0xff]  ;;  %v345_v36 = vld [vmem:[#allocation5 + $0x1a0] sm:$0xff] }
  0x72   : > { %679 = vmatpush.msrb.mxu1 %v447_v51  ;;  %719 = vmatpush.msrb.mxu3 %v448_v53  ;;  %v481_v37 = vld [vmem:[#allocation5 + $0x5e0] sm:$0xff]  ;;  %v346_v38 = vld [vmem:[#allocation5 + $0x1a8] sm:$0xff] }
  0x73   : > { %660 = vmatpush.msrb.mxu0 %v311_v50  ;;  %700 = vmatpush.msrb.mxu2 %v312_v52  ;;  %v482_v39 = vld [vmem:[#allocation5 + $0x5e8] sm:$0xff]  ;;  %v337_v40 = vld [vmem:[#allocation5 + $0x160] sm:$0xff] }
  0x74   : > { %680 = vmatpush.msrb.mxu1 %v439_v55  ;;  %720 = vmatpush.msrb.mxu3 %v440_v57  ;;  %v473_v41 = vld [vmem:[#allocation5 + $0x5a0] sm:$0xff]  ;;  %v338_v42 = vld [vmem:[#allocation5 + $0x168] sm:$0xff] }
  0x75   : > { %661 = vmatpush.msrb.mxu0 %v303_v54  ;;  %701 = vmatpush.msrb.mxu2 %v304_v56  ;;  %v474_v43 = vld [vmem:[#allocation5 + $0x5a8] sm:$0xff]  ;;  %v329_v44 = vld [vmem:[#allocation5 + $0x120] sm:$0xff] }
  0x76   : > { %681 = vmatpush.msrb.mxu1 %v431_v59  ;;  %721 = vmatpush.msrb.mxu3 %v432_v61  ;;  %v465_v45 = vld [vmem:[#allocation5 + $0x560] sm:$0xff]  ;;  %v330_v46 = vld [vmem:[#allocation5 + $0x128] sm:$0xff] }
  0x77   : > { %662 = vmatpush.msrb.mxu0 %v295_v58  ;;  %702 = vmatpush.msrb.mxu2 %v296_v60  ;;  %v466_v47 = vld [vmem:[#allocation5 + $0x568] sm:$0xff]  ;;  %v321_v48 = vld [vmem:[#allocation5 + $0xe0] sm:$0xff] }
  0x78   : > { %583 = vmatmul.f32.vlgmr.msra.gmra.mxu0 %v1724_v62  ;;  %623 = vmatmul.f32.vlgmr.msra.gmra.mxu2 %v1724_v62  ;;  %v457_v49 = vld [vmem:[#allocation5 + $0x520] sm:$0xff]  ;;  %v322_v50 = vld [vmem:[#allocation5 + $0xe8] sm:$0xff] }
  0x79   : > { %727 = vmatpush.msra.mxu0 %v417_v63  ;;  %767 = vmatpush.msra.mxu2 %v418_v0  ;;  %v458_v51 = vld [vmem:[#allocation5 + $0x528] sm:$0xff]  ;;  %v313_v52 = vld [vmem:[#allocation5 + $0xa0] sm:$0xff] }
  0x7a   : > { %682 = vmatpush.msrb.mxu1 %v423_v1  ;;  %722 = vmatpush.msrb.mxu3 %v424_v2  ;;  %v449_v53 = vld [vmem:[#allocation5 + $0x4e0] sm:$0xff]  ;;  %v314_v54 = vld [vmem:[#allocation5 + $0xa8] sm:$0xff]  ;;  %v419_v1 = vld [vmem:[#allocation5 + $0x3f0] sm:$0xff] }
  0x7b   : > { %603 = vmatmul.f32.vlgmr.msra.gmra.mxu1 %v1729_v3  ;;  %643 = vmatmul.f32.vlgmr.msra.gmra.mxu3 %v1729_v3  ;;  %v450_v55 = vld [vmem:[#allocation5 + $0x4e8] sm:$0xff]  ;;  %v305_v56 = vld [vmem:[#allocation5 + $0x60] sm:$0xff]  ;;  %v420_v2 = vld [vmem:[#allocation5 + $0x3f8] sm:$0xff] }
  0x7c   : > { %728 = vmatpush.msra.mxu0 %v409_v4  ;;  %747 = vmatpush.msra.mxu1 %v545_v5  ;;  %v441_v57 = vld [vmem:[#allocation5 + $0x4a0] sm:$0xff]  ;;  %v306_v58 = vld [vmem:[#allocation5 + $0x68] sm:$0xff] }
  0x7d   : > { %768 = vmatpush.msra.mxu2 %v410_v6  ;;  %787 = vmatpush.msra.mxu3 %v546_v7  ;;  %v442_v59 = vld [vmem:[#allocation5 + $0x4a8] sm:$0xff]  ;;  %v297_v60 = vld [vmem:[#allocation5 + $0x20] sm:$0xff]  ;;  %v411_v6 = vld [vmem:[#allocation5 + $0x3b0] sm:$0xff] }
  0x7e   : > { %729 = vmatpush.msra.mxu0 %v401_v8  ;;  %748 = vmatpush.msra.mxu1 %v537_v9  ;;  %v433_v61 = vld [vmem:[#allocation5 + $0x460] sm:$0xff]  ;;  %v298_v63 = vld [vmem:[#allocation5 + $0x28] sm:$0xff]  ;;  %v547_v7 = vld [vmem:[#allocation5 + $0x7f0] sm:$0xff] }
  0x7f   : > { %769 = vmatpush.msra.mxu2 %v402_v10  ;;  %788 = vmatpush.msra.mxu3 %v538_v11  ;;  %v434_v0 = vld [vmem:[#allocation5 + $0x468] sm:$0xff]  ;;  %v425_v4 = vld [vmem:[#allocation5 + $0x420] sm:$0xff]  ;;  %v412_v8 = vld [vmem:[#allocation5 + $0x3b8] sm:$0xff] }
  0x80   : > { %730 = vmatpush.msra.mxu0 %v393_v12  ;;  %749 = vmatpush.msra.mxu1 %v529_v13  ;;  %v426_v5 = vld [vmem:[#allocation5 + $0x428] sm:$0xff]  ;;  %v548_v9 = vld [vmem:[#allocation5 + $0x7f8] sm:$0xff]  ;;  %v403_v10 = vld [vmem:[#allocation5 + $0x370] sm:$0xff] }
  0x81   : > { %770 = vmatpush.msra.mxu2 %v394_v14  ;;  %789 = vmatpush.msra.mxu3 %v530_v15  ;;  %v539_v11 = vld [vmem:[#allocation5 + $0x7b0] sm:$0xff]  ;;  %v404_v12 = vld [vmem:[#allocation5 + $0x378] sm:$0xff] }
  0x82   : > { %731 = vmatpush.msra.mxu0 %v385_v16  ;;  %750 = vmatpush.msra.mxu1 %v521_v17  ;;  %v540_v13 = vld [vmem:[#allocation5 + $0x7b8] sm:$0xff]  ;;  %v395_v14 = vld [vmem:[#allocation5 + $0x330] sm:$0xff] }
  0x83   : > { %771 = vmatpush.msra.mxu2 %v386_v18  ;;  %790 = vmatpush.msra.mxu3 %v522_v19  ;;  %v531_v15 = vld [vmem:[#allocation5 + $0x770] sm:$0xff]  ;;  %v396_v16 = vld [vmem:[#allocation5 + $0x338] sm:$0xff] }
  0x84   : > { %732 = vmatpush.msra.mxu0 %v377_v20  ;;  %751 = vmatpush.msra.mxu1 %v513_v21  ;;  %v532_v17 = vld [vmem:[#allocation5 + $0x778] sm:$0xff]  ;;  %v387_v18 = vld [vmem:[#allocation5 + $0x2f0] sm:$0xff] }
  0x85   : > { %772 = vmatpush.msra.mxu2 %v378_v22  ;;  %791 = vmatpush.msra.mxu3 %v514_v23  ;;  %v523_v19 = vld [vmem:[#allocation5 + $0x730] sm:$0xff]  ;;  %v388_v20 = vld [vmem:[#allocation5 + $0x2f8] sm:$0xff] }
  0x86   : > { %733 = vmatpush.msra.mxu0 %v369_v24  ;;  %752 = vmatpush.msra.mxu1 %v505_v25  ;;  %v524_v21 = vld [vmem:[#allocation5 + $0x738] sm:$0xff]  ;;  %v379_v22 = vld [vmem:[#allocation5 + $0x2b0] sm:$0xff] }
  0x87   : > { %773 = vmatpush.msra.mxu2 %v370_v26  ;;  %792 = vmatpush.msra.mxu3 %v506_v27  ;;  %v515_v23 = vld [vmem:[#allocation5 + $0x6f0] sm:$0xff]  ;;  %v380_v24 = vld [vmem:[#allocation5 + $0x2b8] sm:$0xff] }
  0x88   : > { %734 = vmatpush.msra.mxu0 %v361_v28  ;;  %753 = vmatpush.msra.mxu1 %v497_v29  ;;  %v516_v25 = vld [vmem:[#allocation5 + $0x6f8] sm:$0xff]  ;;  %v371_v26 = vld [vmem:[#allocation5 + $0x270] sm:$0xff] }
  0x89   : > { %774 = vmatpush.msra.mxu2 %v362_v30  ;;  %793 = vmatpush.msra.mxu3 %v498_v31  ;;  %v507_v27 = vld [vmem:[#allocation5 + $0x6b0] sm:$0xff]  ;;  %v372_v28 = vld [vmem:[#allocation5 + $0x278] sm:$0xff] }
  0x8a   : > { %735 = vmatpush.msra.mxu0 %v353_v32  ;;  %754 = vmatpush.msra.mxu1 %v489_v33  ;;  %v508_v29 = vld [vmem:[#allocation5 + $0x6b8] sm:$0xff]  ;;  %v363_v30 = vld [vmem:[#allocation5 + $0x230] sm:$0xff] }
  0x8b   : > { %775 = vmatpush.msra.mxu2 %v354_v34  ;;  %794 = vmatpush.msra.mxu3 %v490_v35  ;;  %v499_v31 = vld [vmem:[#allocation5 + $0x670] sm:$0xff]  ;;  %v364_v32 = vld [vmem:[#allocation5 + $0x238] sm:$0xff] }
  0x8c   : > { %736 = vmatpush.msra.mxu0 %v345_v36  ;;  %755 = vmatpush.msra.mxu1 %v481_v37  ;;  %v500_v33 = vld [vmem:[#allocation5 + $0x678] sm:$0xff]  ;;  %v355_v34 = vld [vmem:[#allocation5 + $0x1f0] sm:$0xff] }
  0x8d   : > { %776 = vmatpush.msra.mxu2 %v346_v38  ;;  %795 = vmatpush.msra.mxu3 %v482_v39  ;;  %v491_v35 = vld [vmem:[#allocation5 + $0x630] sm:$0xff]  ;;  %v356_v36 = vld [vmem:[#allocation5 + $0x1f8] sm:$0xff] }
  0x8e   : > { %737 = vmatpush.msra.mxu0 %v337_v40  ;;  %756 = vmatpush.msra.mxu1 %v473_v41  ;;  %v492_v37 = vld [vmem:[#allocation5 + $0x638] sm:$0xff]  ;;  %v347_v38 = vld [vmem:[#allocation5 + $0x1b0] sm:$0xff] }
  0x8f   : > { %777 = vmatpush.msra.mxu2 %v338_v42  ;;  %796 = vmatpush.msra.mxu3 %v474_v43  ;;  %v483_v39 = vld [vmem:[#allocation5 + $0x5f0] sm:$0xff]  ;;  %v348_v40 = vld [vmem:[#allocation5 + $0x1b8] sm:$0xff] }
  0x90   : > { %738 = vmatpush.msra.mxu0 %v329_v44  ;;  %757 = vmatpush.msra.mxu1 %v465_v45  ;;  %v484_v41 = vld [vmem:[#allocation5 + $0x5f8] sm:$0xff]  ;;  %v339_v42 = vld [vmem:[#allocation5 + $0x170] sm:$0xff] }
  0x91   : > { %778 = vmatpush.msra.mxu2 %v330_v46  ;;  %797 = vmatpush.msra.mxu3 %v466_v47  ;;  %v475_v43 = vld [vmem:[#allocation5 + $0x5b0] sm:$0xff]  ;;  %v340_v44 = vld [vmem:[#allocation5 + $0x178] sm:$0xff] }
  0x92   : > { %663 = vmatmul.f32.vlgmr.msrb.gmra.mxu0 %v1724_v62  ;;  %703 = vmatmul.f32.vlgmr.msrb.gmra.mxu2 %v1724_v62  ;;  %v476_v45 = vld [vmem:[#allocation5 + $0x5b8] sm:$0xff]  ;;  %v331_v46 = vld [vmem:[#allocation5 + $0x130] sm:$0xff] }
  0x93   : > { %739 = vmatpush.msra.mxu0 %v321_v48  ;;  %758 = vmatpush.msra.mxu1 %v457_v49  ;;  %v467_v47 = vld [vmem:[#allocation5 + $0x570] sm:$0xff]  ;;  %v332_v48 = vld [vmem:[#allocation5 + $0x138] sm:$0xff] }
  0x94   : > { %779 = vmatpush.msra.mxu2 %v322_v50  ;;  %798 = vmatpush.msra.mxu3 %v458_v51  ;;  %v468_v49 = vld [vmem:[#allocation5 + $0x578] sm:$0xff]  ;;  %v323_v50 = vld [vmem:[#allocation5 + $0xf0] sm:$0xff] }
  0x95   : > { %683 = vmatmul.f32.vlgmr.msrb.gmra.mxu1 %v1729_v3  ;;  %723 = vmatmul.f32.vlgmr.msrb.gmra.mxu3 %v1729_v3  ;;  %v459_v51 = vld [vmem:[#allocation5 + $0x530] sm:$0xff] }
  0x96   : > { %740 = vmatpush.msra.mxu0 %v313_v52  ;;  %759 = vmatpush.msra.mxu1 %v449_v53  ;;  %v324_v52 = vld [vmem:[#allocation5 + $0xf8] sm:$0xff] }
  0x97   : > { %780 = vmatpush.msra.mxu2 %v314_v54  ;;  %799 = vmatpush.msra.mxu3 %v450_v55  ;;  %v460_v53 = vld [vmem:[#allocation5 + $0x538] sm:$0xff]  ;;  %v315_v54 = vld [vmem:[#allocation5 + $0xb0] sm:$0xff] }
  0x98   : > { %741 = vmatpush.msra.mxu0 %v305_v56  ;;  %760 = vmatpush.msra.mxu1 %v441_v57  ;;  %v451_v55 = vld [vmem:[#allocation5 + $0x4f0] sm:$0xff]  ;;  %v316_v56 = vld [vmem:[#allocation5 + $0xb8] sm:$0xff] }
  0x99   : > { %781 = vmatpush.msra.mxu2 %v306_v58  ;;  %800 = vmatpush.msra.mxu3 %v442_v59  ;;  %v452_v57 = vld [vmem:[#allocation5 + $0x4f8] sm:$0xff]  ;;  %v307_v58 = vld [vmem:[#allocation5 + $0x70] sm:$0xff] }
  0x9a   : > { %742 = vmatpush.msra.mxu0 %v297_v60  ;;  %761 = vmatpush.msra.mxu1 %v433_v61  ;;  %v443_v59 = vld [vmem:[#allocation5 + $0x4b0] sm:$0xff]  ;;  %v308_v60 = vld [vmem:[#allocation5 + $0x78] sm:$0xff] }
  0x9b   : > { %782 = vmatpush.msra.mxu2 %v298_v63  ;;  %801 = vmatpush.msra.mxu3 %v434_v0  ;;  %v444_v61 = vld [vmem:[#allocation5 + $0x4b8] sm:$0xff]  ;;  %v299_v63 = vld [vmem:[#allocation5 + $0x30] sm:$0xff] }
  0x9c   : > { %743 = vmatmul.f32.vlgmr.msra.gmra.mxu0 %v1724_v62  ;;  %783 = vmatmul.f32.vlgmr.msra.gmra.mxu2 %v1724_v62  ;;  %v435_v0 = vld [vmem:[#allocation5 + $0x470] sm:$0xff] }
  0x9d   : > { %807 = vmatpush.msrb.mxu0 %v419_v1  ;;  %847 = vmatpush.msrb.mxu2 %v420_v2  ;;  %v300_v1 = vld [vmem:[#allocation5 + $0x38] sm:$0xff] }
  0x9e   : > { %762 = vmatpush.msra.mxu1 %v425_v4  ;;  %802 = vmatpush.msra.mxu3 %v426_v5  ;;  %v436_v2 = vld [vmem:[#allocation5 + $0x478] sm:$0xff]  ;;  %v427_v4 = vld [vmem:[#allocation5 + $0x430] sm:$0xff] }
  0x9f   : > { %763 = vmatmul.f32.vlgmr.msra.gmra.mxu1 %v1729_v3  ;;  %803 = vmatmul.f32.vlgmr.msra.gmra.mxu3 %v1729_v3  ;;  %v428_v5 = vld [vmem:[#allocation5 + $0x438] sm:$0xff] }
  0xa0   : > { %808 = vmatpush.msrb.mxu0 %v411_v6  ;;  %827 = vmatpush.msrb.mxu1 %v547_v7  ;;  %v986_v6 = vld [vmem:[#allocation8 + $0x78] sm:$0xff]  ;;  %v985_v7 = vld [vmem:[#allocation8 + $0x70] sm:$0xff] }
  0xa1   : > { %848 = vmatpush.msrb.mxu2 %v412_v8  ;;  %867 = vmatpush.msrb.mxu3 %v548_v9  ;;  %v984_v8 = vld [vmem:[#allocation8 + $0x68] sm:$0xff]  ;;  %v983_v9 = vld [vmem:[#allocation8 + $0x60] sm:$0xff] }
  0xa2   : > { %809 = vmatpush.msrb.mxu0 %v403_v10  ;;  %828 = vmatpush.msrb.mxu1 %v539_v11  ;;  %v1002_v10 = vld [vmem:[#allocation8 + $0xf8] sm:$0xff] }
  0xa3   : > { %849 = vmatpush.msrb.mxu2 %v404_v12  ;;  %868 = vmatpush.msrb.mxu3 %v540_v13  ;;  %v982_v12 = vld [vmem:[#allocation8 + $0x58] sm:$0xff]  ;;  %v981_v13 = vld [vmem:[#allocation8 + $0x50] sm:$0xff] }
  0xa4   : > { %810 = vmatpush.msrb.mxu0 %v395_v14  ;;  %829 = vmatpush.msrb.mxu1 %v531_v15  ;;  %v1000_v14 = vld [vmem:[#allocation8 + $0xe8] sm:$0xff] }
  0xa5   : > { %850 = vmatpush.msrb.mxu2 %v396_v16  ;;  %869 = vmatpush.msrb.mxu3 %v532_v17  ;;  %v999_v16 = vld [vmem:[#allocation8 + $0xe0] sm:$0xff] }
  0xa6   : > { %811 = vmatpush.msrb.mxu0 %v387_v18  ;;  %830 = vmatpush.msrb.mxu1 %v523_v19  ;;  %v979_v18 = vld [vmem:[#allocation8 + $0x40] sm:$0xff]  ;;  %v998_v19 = vld [vmem:[#allocation8 + $0xd8] sm:$0xff] }
  0xa7   : > { %851 = vmatpush.msrb.mxu2 %v388_v20  ;;  %870 = vmatpush.msrb.mxu3 %v524_v21  ;;  %v978_v21 = vld [vmem:[#allocation8 + $0x38] sm:$0xff] }
  0xa8   : > { %812 = vmatpush.msrb.mxu0 %v379_v22  ;;  %831 = vmatpush.msrb.mxu1 %v515_v23  ;;  %v997_v22 = vld [vmem:[#allocation8 + $0xd0] sm:$0xff] }
  0xa9   : > { %852 = vmatpush.msrb.mxu2 %v380_v24  ;;  %871 = vmatpush.msrb.mxu3 %v516_v25  ;;  %v977_v24 = vld [vmem:[#allocation8 + $0x30] sm:$0xff]  ;;  %v996_v25 = vld [vmem:[#allocation8 + $0xc8] sm:$0xff] }
  0xaa   : > { %813 = vmatpush.msrb.mxu0 %v371_v26  ;;  %832 = vmatpush.msrb.mxu1 %v507_v27  ;;  %v976_v27 = vld [vmem:[#allocation8 + $0x28] sm:$0xff] }
  0xab   : > { %853 = vmatpush.msrb.mxu2 %v372_v28  ;;  %872 = vmatpush.msrb.mxu3 %v508_v29  ;;  %v995_v28 = vld [vmem:[#allocation8 + $0xc0] sm:$0xff]  ;;  %v1757_v29 = vld [vmem:[#allocation7] sm:$0xff] }
  0xac   : > { %814 = vmatpush.msrb.mxu0 %v363_v30  ;;  %833 = vmatpush.msrb.mxu1 %v499_v31  ;;  %v975_v31 = vld [vmem:[#allocation8 + $0x20] sm:$0xff] }
  0xad   : > { %854 = vmatpush.msrb.mxu2 %v364_v32  ;;  %873 = vmatpush.msrb.mxu3 %v500_v33  ;;  %v994_v32 = vld [vmem:[#allocation8 + $0xb8] sm:$0xff]  ;;  %v555_v33 = vperm.slane %v1757_v29, 4 }
  0xae   : > { %815 = vmatpush.msrb.mxu0 %v355_v34  ;;  %834 = vmatpush.msrb.mxu1 %v491_v35  ;;  %v974_v34 = vld [vmem:[#allocation8 + $0x18] sm:$0xff]  ;;  %v993_v35 = vld [vmem:[#allocation8 + $0xb0] sm:$0xff] }
  0xaf   : > { %855 = vmatpush.msrb.mxu2 %v356_v36  ;;  %874 = vmatpush.msrb.mxu3 %v492_v37 }
  0xb0   : > { %816 = vmatpush.msrb.mxu0 %v347_v38  ;;  %835 = vmatpush.msrb.mxu1 %v483_v39  ;;  %v973_v38 = vld [vmem:[#allocation8 + $0x10] sm:$0xff]  ;;  %v992_v39 = vld [vmem:[#allocation8 + $0xa8] sm:$0xff] }
  0xb1   : > { %856 = vmatpush.msrb.mxu2 %v348_v40  ;;  %875 = vmatpush.msrb.mxu3 %v484_v41  ;;  %v972_v41 = vld [vmem:[#allocation8 + $0x8] sm:$0xff] }
  0xb2   : > { %817 = vmatpush.msrb.mxu0 %v339_v42  ;;  %836 = vmatpush.msrb.mxu1 %v475_v43  ;;  %v991_v42 = vld [vmem:[#allocation8 + $0xa0] sm:$0xff] }
  0xb3   : > { %857 = vmatpush.msrb.mxu2 %v340_v44  ;;  %876 = vmatpush.msrb.mxu3 %v476_v45  ;;  %v556_v44 = vperm.slane %v1757_v29, 5 }
  0xb4   : > { %818 = vmatpush.msrb.mxu0 %v331_v46  ;;  %837 = vmatpush.msrb.mxu1 %v467_v47  ;;  %v971_v46 = vld [vmem:[#allocation8] sm:$0xff]  ;;  %v990_v47 = vld [vmem:[#allocation8 + $0x98] sm:$0xff] }
  0xb5   : > { %858 = vmatpush.msrb.mxu2 %v332_v48  ;;  %877 = vmatpush.msrb.mxu3 %v468_v49  ;;  %v1018_v48 = vld [vmem:[#allocation8 + $0x178] sm:$0xff] }
  0xb6   : > { %819 = vmatpush.msrb.mxu0 %v323_v50  ;;  %838 = vmatpush.msrb.mxu1 %v459_v51  ;;  %v989_v51 = vld [vmem:[#allocation8 + $0x90] sm:$0xff] }
  0xb7   : > { %859 = vmatpush.msrb.mxu2 %v324_v52  ;;  %878 = vmatpush.msrb.mxu3 %v460_v53  ;;  %v1017_v53 = vld [vmem:[#allocation8 + $0x170] sm:$0xff] }
  0xb8   : > { %820 = vmatpush.msrb.mxu0 %v315_v54  ;;  %839 = vmatpush.msrb.mxu1 %v451_v55  ;;  %v988_v54 = vld [vmem:[#allocation8 + $0x88] sm:$0xff] }
  0xb9   : > { %860 = vmatpush.msrb.mxu2 %v316_v56  ;;  %879 = vmatpush.msrb.mxu3 %v452_v57  ;;  %v1016_v56 = vld [vmem:[#allocation8 + $0x168] sm:$0xff] }
  0xba   : > { %821 = vmatpush.msrb.mxu0 %v307_v58  ;;  %840 = vmatpush.msrb.mxu1 %v443_v59  ;;  %v987_v58 = vld [vmem:[#allocation8 + $0x80] sm:$0xff] }
  0xbb   : > { %861 = vmatpush.msrb.mxu2 %v308_v60  ;;  %880 = vmatpush.msrb.mxu3 %v444_v61  ;;  %v1015_v59 = vld [vmem:[#allocation8 + $0x160] sm:$0xff]  ;;  %v1034_v60 = vld [vmem:[#allocation8 + $0x1f8] sm:$0xff] }
  0xbc   : > { %822 = vmatpush.msrb.mxu0 %v299_v63  ;;  %841 = vmatpush.msrb.mxu1 %v435_v0  ;;  %v1014_v63 = vld [vmem:[#allocation8 + $0x158] sm:$0xff]  ;;  %v1033_v0 = vld [vmem:[#allocation8 + $0x1f0] sm:$0xff] }
  0xbd   : > { %862 = vmatpush.msrb.mxu2 %v300_v1  ;;  %881 = vmatpush.msrb.mxu3 %v436_v2  ;;  %v551_v2 = vperm.slane %v1757_v29, 0 }
  0xbe   : > { %823 = vmatmul.f32.vlgmr.msrb.gmra.mxu0 %v1724_v62  ;;  %863 = vmatmul.f32.vlgmr.msrb.gmra.mxu2 %v1724_v62  ;;  %v1001_v62 = vld [vmem:[#allocation8 + $0xf0] sm:$0xff] }
  0xbf   : > { %842 = vmatpush.msrb.mxu1 %v427_v4  ;;  %882 = vmatpush.msrb.mxu3 %v428_v5  ;;  %v1013_v5 = vld [vmem:[#allocation8 + $0x150] sm:$0xff] }
  0xc0   : > { %843 = vmatmul.f32.vlgmr.msrb.gmra.mxu1 %v1729_v3  ;;  %883 = vmatmul.f32.vlgmr.msrb.gmra.mxu3 %v1729_v3  ;;  %v980_v3 = vld [vmem:[#allocation8 + $0x48] sm:$0xff] }
  0xc1   : > { %1039 = vmatpush.msra.mxu0 %v986_v6  ;;  %1059 = vmatpush.msra.mxu1 %v1002_v10  ;;  %v1032_v6 = vld [vmem:[#allocation8 + $0x1e8] sm:$0xff]  ;;  %v1011_v10 = vld [vmem:[#allocation8 + $0x140] sm:$0xff] }
  0xc2   : > { %1079 = vmatpush.msra.mxu2 %v1018_v48  ;;  %1099 = vmatpush.msra.mxu3 %v1034_v60 }
  0xc3   : > { %1040 = vmatpush.msra.mxu0 %v985_v7  ;;  %1060 = vmatpush.msra.mxu1 %v1001_v62  ;;  %v1012_v7 = vld [vmem:[#allocation8 + $0x148] sm:$0xff] }
  0xc4   : > { %1080 = vmatpush.msra.mxu2 %v1017_v53  ;;  %1100 = vmatpush.msra.mxu3 %v1033_v0  ;;  %v1023_v53 = vld [vmem:[#allocation8 + $0x1a0] sm:$0xff] }
  0xc5   : > { %1041 = vmatpush.msra.mxu0 %v984_v8  ;;  %1061 = vmatpush.msra.mxu1 %v1000_v14  ;;  %v1031_v8 = vld [vmem:[#allocation8 + $0x1e0] sm:$0xff] }
  0xc6   : > { %1081 = vmatpush.msra.mxu2 %v1016_v56  ;;  %1101 = vmatpush.msra.mxu3 %v1032_v6  ;;  %v1020_v6 = vld [vmem:[#allocation8 + $0x188] sm:$0xff] }
  0xc7   : > { %1042 = vmatpush.msra.mxu0 %v983_v9  ;;  %1062 = vmatpush.msra.mxu1 %v999_v16  ;;  %v1029_v16 = vld [vmem:[#allocation8 + $0x1d0] sm:$0xff] }
  0xc8   : > { %1082 = vmatpush.msra.mxu2 %v1015_v59  ;;  %1102 = vmatpush.msra.mxu3 %v1031_v8 }
  0xc9   : > { %1043 = vmatpush.msra.mxu0 %v982_v12  ;;  %1063 = vmatpush.msra.mxu1 %v998_v19  ;;  %v1030_v12 = vld [vmem:[#allocation8 + $0x1d8] sm:$0xff] }
  0xca   : > { %1083 = vmatpush.msra.mxu2 %v1014_v63  ;;  %1103 = vmatpush.msra.mxu3 %v1030_v12 }
  0xcb   : > { %1044 = vmatpush.msra.mxu0 %v981_v13  ;;  %1064 = vmatpush.msra.mxu1 %v997_v22  ;;  %v552_v13 = vperm.slane %v1757_v29, 1 }
  0xcc   : > { %1084 = vmatpush.msra.mxu2 %v1013_v5  ;;  %1104 = vmatpush.msra.mxu3 %v1029_v16 }
  0xcd   : > { %1045 = vmatpush.msra.mxu0 %v980_v3  ;;  %1065 = vmatpush.msra.mxu1 %v996_v25  ;;  %v1010_v3 = vld [vmem:[#allocation8 + $0x138] sm:$0xff] }
  0xce   : > { %1085 = vmatpush.msra.mxu2 %v1012_v7 }
  0xcf   : > { %1046 = vmatpush.msra.mxu0 %v979_v18  ;;  %1066 = vmatpush.msra.mxu1 %v995_v28  ;;  %v1027_v28 = vld [vmem:[#allocation8 + $0x1c0] sm:$0xff] }
  0xd0   : > { %1086 = vmatpush.msra.mxu2 %v1011_v10 }
  0xd1   : > { %1047 = vmatpush.msra.mxu0 %v978_v21  ;;  %1067 = vmatpush.msra.mxu1 %v994_v32  ;;  %v1009_v21 = vld [vmem:[#allocation8 + $0x130] sm:$0xff] }
  0xd2   : > { %1087 = vmatpush.msra.mxu2 %v1010_v3 }
  0xd3   : > { %1048 = vmatpush.msra.mxu0 %v977_v24  ;;  %1068 = vmatpush.msra.mxu1 %v993_v35 }
  0xd4   : > { %1088 = vmatpush.msra.mxu2 %v1009_v21 }
  0xd5   : > { %1049 = vmatpush.msra.mxu0 %v976_v27  ;;  %1069 = vmatpush.msra.mxu1 %v992_v39  ;;  %v1008_v27 = vld [vmem:[#allocation8 + $0x128] sm:$0xff]  ;;  %v1006_v39 = vld [vmem:[#allocation8 + $0x118] sm:$0xff] }
  0xd6   : > { %1089 = vmatpush.msra.mxu2 %v1008_v27 }
  0xd7   : > { %1050 = vmatpush.msra.mxu0 %v975_v31  ;;  %1070 = vmatpush.msra.mxu1 %v991_v42 }
  0xd9   : > { %1051 = vmatpush.msra.mxu0 %v974_v34  ;;  %1071 = vmatpush.msra.mxu1 %v990_v47 }
  0xdb   : > { %1052 = vmatpush.msra.mxu0 %v973_v38  ;;  %1072 = vmatpush.msra.mxu1 %v989_v51 }
  0xdd   : > { %1053 = vmatpush.msra.mxu0 %v972_v41  ;;  %1073 = vmatpush.msra.mxu1 %v988_v54  ;;  %v1003_v54 = vld [vmem:[#allocation8 + $0x100] sm:$0xff] }
  0xdf   : > { %1054 = vmatpush.msra.mxu0 %v971_v46  ;;  %1074 = vmatpush.msra.mxu1 %v987_v58  ;;  %v1024_v46 = vld [vmem:[#allocation8 + $0x1a8] sm:$0xff]  ;;  %v1022_v58 = vld [vmem:[#allocation8 + $0x198] sm:$0xff] }
  0xf5   : > { %v1745_v11 = vpop.f32.mrf.mxu0 }
  0xf6   : > { %v585_v9 = vadd.f32 %v1745_v11, %v551_v2  ;;  %v1028_v11 = vld [vmem:[#allocation8 + $0x1c8] sm:$0xff]  ;;  %v558_v2 = vperm.slane %v1757_v29, 7 }
  0xf7   : > { %1105 = vmatpush.msra.mxu3 %v1028_v11 }
  0xf8   : > { %v1747_v15 = vpop.f32.mrf.mxu1 }
  0xf9   : > { %v605_v19 = vadd.f32 %v1747_v15, %v585_v9  ;;  %1106 = vmatpush.msra.mxu3 %v1027_v28  ;;  %v1007_v15 = vld [vmem:[#allocation8 + $0x120] sm:$0xff] }
  0xfa   : > { %1090 = vmatpush.msra.mxu2 %v1007_v15 }
  0xfb   : > { %v1749_v17 = vpop.f32.mrf.mxu2 }
  0xfc   : > { %v625_v24 = vadd.f32 %v1749_v17, %v552_v13  ;;  %1091 = vmatpush.msra.mxu2 %v1006_v39 }
  0xfe   : > { %v1753_v23 = vpop.f32.mrf.mxu3 }
 0x10f   : > { %v1751_v20 = vpop.f32.mrf.mxu0 }
 0x112   : > { %v1755_v26 = vpop.f32.mrf.mxu1 }
 0x115   : > { %v1759_v30 = vpop.f32.mrf.mxu2 }
 0x118   : > { %v1762_v36 = vpop.f32.mrf.mxu3 }
 0x119   : > { %v744_v37 = vpop.f32.mrf.mxu0 }
 0x11a   : > { %v745_v40 = vadd.f32 %v744_v37, %v555_v33  ;;  %v1026_v33 = vld [vmem:[#allocation8 + $0x1b8] sm:$0xff]  ;;  %v645_v37 = vadd.f32 %v1753_v23, %v625_v24  ;;  %v554_v24 = vperm.slane %v1757_v29, 3 }
 0x11b   : > { %1107 = vmatpush.msra.mxu3 %v1026_v33 }
 0x11c   : > { %v764_v43 = vpop.f32.mrf.mxu1 }
 0x11d   : > { %v765_v45 = vadd.f32 %v764_v43, %v745_v40  ;;  %v1025_v40 = vld [vmem:[#allocation8 + $0x1b0] sm:$0xff] }
 0x11e   : > { %1108 = vmatpush.msra.mxu3 %v1025_v40 }
 0x11f   : > { %v1250_v49 = vmul.f32 -1.442695, %v765_v45  ;;  %v784_v50 = vpop.f32.mrf.mxu2  ;;  %v1005_v45 = vld [vmem:[#allocation8 + $0x110] sm:$0xff] }
 0x120   : > { %v785_v52 = vadd.f32 %v784_v50, %v556_v44  ;;  %v557_v44 = vperm.slane %v1757_v29, 6  ;;  %1092 = vmatpush.msra.mxu2 %v1005_v45  ;;  %1109 = vmatpush.msra.mxu3 %v1024_v46 }
 0x121   : > { %1341 = vpow2.f32 %v1250_v49 }
 0x122   : > { %v804_v55 = vpop.f32.mrf.mxu3  ;;  %1110 = vmatpush.msra.mxu3 %v1023_v53 }
 0x123   : > { %v805_v57 = vadd.f32 %v804_v55, %v785_v52  ;;  %v1004_v52 = vld [vmem:[#allocation8 + $0x108] sm:$0xff] }
 0x124   : > { %1093 = vmatpush.msra.mxu2 %v1004_v52  ;;  %1111 = vmatpush.msra.mxu3 %v1022_v58 }
 0x125   : > { %v1251_v61 = vmul.f32 -1.442695, %v805_v57 }
 0x126   : > { %1094 = vmatpush.msra.mxu2 %v1003_v54 }
 0x127   : > { %v1342_v1 = vpop.eup %1341  ;;  %1343 = vpow2.f32 %v1251_v61 }
 0x128   : > { %v903_v4 = vadd.f32 1.0, %v1342_v1 }
 0x12a   : > { %1345 = vrcp.f32 %v903_v4  ;;  %v918_v25 = vand.u32 2147483648, %v903_v4  ;;  %vm912_vm0 = vweird.f32 %v903_v4  ;;  %v916_v32 = vand.u32 2147483647, %v903_v4 }
 0x12c   : > { %v919_v38 = vor.u32 1.1754944e-38, %v918_v25  ;;  %vm1779_vm3 = vcmp.eq.f32.partialorder %v916_v32, 8.507059e+37  ;;  %v705_v32 = vadd.f32 %v1759_v30, %v554_v24 }
 0x12d   : > { %v1344_v62 = vpop.eup %1343 }
 0x12e   : > { %v1768_v14 = vadd.f32 1.0, %v1344_v62  ;;  %v1019_v62 = vld [vmem:[#allocation8 + $0x180] sm:$0xff] }
 0x130   : > { %v1346_v18 = vpop.eup %1345  ;;  %1347 = vrcp.f32 %v1768_v14  ;;  %vm927_vm4 = vweird.f32 %v1768_v14  ;;  %v933_v23 = vand.u32 2147483648, %v1768_v14  ;;  %v931_v49 = vand.u32 2147483647, %v1768_v14 }
 0x131   : > { %v908_v22 = vmul.f32 %v1346_v18, %v903_v4  ;;  %vm913_vm1 = vweird.f32 %v1346_v18  ;;  %1349 = vtanh.f32 %v605_v19  ;;  %v1021_v4 = vld [vmem:[#allocation8 + $0x190] sm:$0xff]  ;;  %v553_v19 = vperm.slane %v1757_v29, 2 }
 0x132   : > { %vm1774_vm2 = vmor %vm912_vm0, %vm913_vm1  ;;  %1351 = vtanh.f32 %v645_v37  ;;  %v934_v61 = vor.u32 1.1754944e-38, %v933_v23  ;;  %vm932_vm7 = vcmp.eq.f32.partialorder %v931_v49, 8.507059e+37  ;;  %1112 = vmatpush.msra.mxu3 %v1021_v4  ;;  %v1340_v49 = vld [vmem:[%s1848_s4] ss:$0 sm:$0xff] }
 0x133   : > { %v909_v31 = vsub.f32 1.0, %v908_v22  ;;  %v665_v11 = vadd.f32 %v1751_v20, %v553_v19  ;;  %v725_v20 = vadd.f32 %v1762_v36, %v705_v32 }
 0x134   : > { %1113 = vmatpush.msra.mxu3 %v1020_v6 }
 0x135   : > { %v910_v34 = vmul.f32 %v1346_v18, %v909_v31  ;;  %v685_v28 = vadd.f32 %v1755_v26, %v665_v11 }
 0x136   : > { %v1348_v35 = vpop.eup %1347  ;;  %1114 = vmatpush.msra.mxu3 %v1019_v62 }
 0x137   : > { %v923_v41 = vmul.f32 %v1348_v35, %v1768_v14  ;;  %v911_v42 = vadd.f32 %v1346_v18, %v910_v34  ;;  %vm928_vm5 = vweird.f32 %v1348_v35  ;;  %v1350_v50 = vpop.eup %1349 }
 0x138   : > { %vm1794_vm6 = vmor %vm927_vm4, %vm928_vm5  ;;  %v1352_v7 = vpop.eup %1351 }
 0x139   : > { %v924_v47 = vsub.f32 1.0, %v923_v41  ;;  %v915_v48 = vsel %vm1774_vm2, %v1346_v18, %v911_v42 }
 0x13a   : > { %v920_v51 = vsel %vm1779_vm3, %v919_v38, %v915_v48 }
 0x13b   : > { %v824_v55 = vpop.f32.mrf.mxu0  ;;  %v967_v56 = vmul.f32 %v1350_v50, %v920_v51  ;;  %v925_v57 = vmul.f32 %v1348_v35, %v924_v47 }
 0x13c   : > { %v825_v59 = vadd.f32 %v824_v55, %v557_v44 }
 0x13d   : > { %v844_v63 = vpop.f32.mrf.mxu1  ;;  %1055 = vmatmul.f32.vlgmr.msra.gmra.mxu0 %v967_v56  ;;  %v926_v0 = vadd.f32 %v1348_v35, %v925_v57 }
 0x13e   : > { %v845_v1 = vadd.f32 %v844_v63, %v825_v59 }
 0x13f   : > { %v930_v5 = vsel %vm1794_vm6, %v1348_v35, %v926_v0 }
 0x140   : > { %v1252_v8 = vmul.f32 -1.442695, %v845_v1  ;;  %v935_v9 = vsel %vm932_vm7, %v934_v61, %v930_v5 }
 0x141   : > { %v864_v10 = vpop.f32.mrf.mxu2  ;;  %v968_v12 = vmul.f32 %v1352_v7, %v935_v9 }
 0x142   : > { %1353 = vpow2.f32 %v1252_v8  ;;  %v865_v13 = vadd.f32 %v864_v10, %v558_v2 }
 0x143   : > { %v884_v14 = vpop.f32.mrf.mxu3  ;;  %1075 = vmatmul.f32.vlgmr.msra.gmra.mxu1 %v968_v12 }
 0x144   : > { %v885_v3 = vadd.f32 %v884_v14, %v865_v13 }
 0x146   : > { %v1253_v16 = vmul.f32 -1.442695, %v885_v3 }
 0x148   : > { %v1354_v18 = vpop.eup %1353  ;;  %1355 = vpow2.f32 %v1253_v16 }
 0x149   : > { %v905_v21 = vadd.f32 1.0, %v1354_v18 }
 0x14b   : > { %1357 = vrcp.f32 %v905_v21  ;;  %v948_v33 = vand.u32 2147483648, %v905_v21  ;;  %v946_v35 = vand.u32 2147483647, %v905_v21  ;;  %vm942_vm9 = vweird.f32 %v905_v21 }
 0x14d   : > { %v949_v29 = vor.u32 1.1754944e-38, %v948_v33  ;;  %vm947_vm11 = vcmp.eq.f32.partialorder %v946_v35, 8.507059e+37 }
 0x14e   : > { %v1356_v22 = vpop.eup %1355 }
 0x14f   : > { %v906_v25 = vadd.f32 1.0, %v1356_v22 }
 0x151   : > { %v1358_v27 = vpop.eup %1357  ;;  %1359 = vrcp.f32 %v906_v25  ;;  %v963_v41 = vand.u32 2147483648, %v906_v25  ;;  %v961_v44 = vand.u32 2147483647, %v906_v25  ;;  %vm957_vm13 = vweird.f32 %v906_v25 }
 0x152   : > { %v938_v31 = vmul.f32 %v1358_v27, %v905_v21  ;;  %1361 = vtanh.f32 %v685_v28  ;;  %vm943_vm8 = vweird.f32 %v1358_v27 }
 0x153   : > { %vm944_vm10 = vmor %vm942_vm9, %vm943_vm8  ;;  %1363 = vtanh.f32 %v725_v20  ;;  %v964_v23 = vor.u32 1.1754944e-38, %v963_v41  ;;  %vm962_vm15 = vcmp.eq.f32.partialorder %v961_v44, 8.507059e+37 }
 0x154   : > { %v939_v15 = vsub.f32 1.0, %v938_v31 }
 0x156   : > { %v940_v34 = vmul.f32 %v1358_v27, %v939_v15 }
 0x157   : > { %v1360_v37 = vpop.eup %1359 }
 0x158   : > { %v953_v17 = vmul.f32 %v1360_v37, %v906_v25  ;;  %v941_v38 = vadd.f32 %v1358_v27, %v940_v34  ;;  %v1362_v40 = vpop.eup %1361  ;;  %vm958_vm12 = vweird.f32 %v1360_v37 }
 0x159   : > { %vm959_vm14 = vmor %vm957_vm13, %vm958_vm12  ;;  %v1364_v46 = vpop.eup %1363 }
 0x15a   : > { %v954_v39 = vsub.f32 1.0, %v953_v17  ;;  %v945_v26 = vsel %vm944_vm10, %v1358_v27, %v941_v38 }
 0x15b   : > { %v950_v30 = vsel %vm947_vm11, %v949_v29, %v945_v26 }
 0x15c   : > { %v969_v42 = vmul.f32 %v1362_v40, %v950_v30  ;;  %v955_v43 = vmul.f32 %v1360_v37, %v954_v39 }
 0x15e   : > { %1095 = vmatmul.f32.vlgmr.msra.gmra.mxu2 %v969_v42  ;;  %v956_v36 = vadd.f32 %v1360_v37, %v955_v43 }
 0x160   : > { %v960_v45 = vsel %vm959_vm14, %v1360_v37, %v956_v36 }
 0x161   : > { %v965_v47 = vsel %vm962_vm15, %v964_v23, %v960_v45 }
 0x162   : > { %v970_v48 = vmul.f32 %v1364_v46, %v965_v47 }
 0x164   : > { %1115 = vmatmul.f32.vlgmr.msra.gmra.mxu3 %v970_v48 }
 0x1ba   : > { %v1056_v50 = vpop.f32.mrf.mxu0 }
 0x1bb   : > { %v1057_v52 = vadd.f32 %v1340_v49, %v1056_v50 }
 0x1c0   : > { %v1076_v51 = vpop.f32.mrf.mxu1 }
 0x1c1   : > { %v1077_v54 = vadd.f32 %v1076_v51, %v1057_v52 }
 0x1e1   : > { %v1096_v53 = vpop.f32.mrf.mxu2 }
 0x1e2   : > { %v1097_v55 = vadd.f32 %v1096_v53, %v1077_v54 }
 0x1e7   : > { %v1116_v56 = vpop.f32.mrf.mxu3 }
 0x1e8   : > { %v1117_v57 = vadd.f32 %v1116_v56, %v1097_v55 }
 0x1ea   : > { %1119 = vst [vmem:[%s290_s27] sm:$0xff] %v1117_v57 }
 0x1eb   : > { %1512 = shalt.err (!%p1509_p9)
}
 0x1ec   : > { %1273 = dma.vmem_to_hbm [thread:$0]  (%p1674_p13), %s1134_s10, 128, %s1136_s9, %s1121_s11  }
 0x1ed PF: > { %s1147_s7 = sand.u32 1, %s1547_s18   ;;  %p1862_p10 = scmp.ge.s32.totalorder %s1559_s21, 2 }
 0x1ee   : > { %s1148_s14 = scalar_lea.sflag [#allocation4], %s1147_s7 }
 0x1ef   : > { %p1290_p11 = pnand %p1862_p10, %p1679_p4 }
 0x1f1   : > { %p1291_p0 = pneg %p1290_p11 }
 0x1f3   : > { %1542 = dma.done.wait (%p1291_p0), %s1148_s14, 128  }
 0x1f4   : > { %1544 = vsyncadd (%p1291_p0), %s1148_s14, 4294967168  ;;  %p20_p2 = scmp.ge.s32.totalorder %s1654_s24, 4   ;;  %s1863_s18 = smov %s1551_s19 }
 0x1f5   : > { %s1864_s19 = smov %s1555_s20  ;;  %s1865_s20 = smov %s1666_s29 }
 0x1f6   : > { %s1866_s21 = smov %s1654_s24  ;;  %22 = sbr.rel (!%p20_p2) target bundleno = 7 (0x7), region = 97 }
 0x1fb   :  { %1154 = vsyncpa [#allocation3], 1 }
 0x1fc   :  { %1156 = vsyncpa [#allocation3 + $0x1], 1 }
 0x1fd   :  { %1157 = vsyncpa [#allocation6], 1 }
 0x1fe   :  { %1158 = vsyncpa [#allocation9], 1 }
 0x1ff   :  { %1159 = vsyncpa [#allocation4], 1 }
 0x200   :  { %1161 = vsyncpa [#allocation4 + $0x1], 1 }

</bundles_post_ra>
